<compile_context>
chip_gen: v5e
topology: v5e:2x2
jax: 0.10.0
libtpu: 0.0.40
codegen_flags: <defaults>
</compile_context>

<pallas_src>
import functools

import jax
import jax.numpy as jnp
from jax import lax
from jax.experimental import pallas as pl
from jax.experimental.pallas import tpu as pltpu


def _linear_relu_single_k_kernel(x_ref, w_ref, b_ref, o_ref):
    # x_ref: (tm, K), w_ref: (tn, K), b_ref: (1, tn), o_ref: (tm, tn).
    y = lax.dot_general(
        x_ref[...], w_ref[...],
        dimension_numbers=(((1,), (1,)), ((), ())),
        preferred_element_type=jnp.float32,
    )
    o_ref[...] = jnp.maximum(y + b_ref[...], 0.0).astype(o_ref.dtype)


def _linear_relu_ktiled_kernel(x_ref, w_ref, b_ref, o_ref, acc_ref):
    # x_ref: (tm, tk), w_ref: (tn, tk), b_ref: (1, tn), o_ref: (tm, tn),
    # acc_ref: (tm, tn) f32 scratch persisting across the K grid axis.
    k = pl.program_id(2)

    @pl.when(k == 0)
    def _init():
        acc_ref[...] = jnp.zeros_like(acc_ref)

    acc_ref[...] += lax.dot_general(
        x_ref[...], w_ref[...],
        dimension_numbers=(((1,), (1,)), ((), ())),
        preferred_element_type=jnp.float32,
    )

    @pl.when(k == pl.num_programs(2) - 1)
    def _epilogue():
        y = acc_ref[...] + b_ref[...]          # bias added exactly once (f32)
        o_ref[...] = jnp.maximum(y, 0.0).astype(o_ref.dtype)


def _ceil_to(x, m):
    return ((x + m - 1) // m) * m


def _plan(dim, target, align):
    """Return (padded_dim, tile).

    If the aligned dim fits in one tile, the full (aligned) dim is the tile
    (legal: block == full array dim). Otherwise tile at `target` and pad the
    dim to a multiple of the tile.
    """
    p = _ceil_to(dim, align)
    if p <= target:
        return p, p
    return _ceil_to(dim, target), target


@functools.partial(jax.jit, static_argnames=("tm", "tn", "tk"))
def relu_net_forward(x, w, b, *, tm=256, tn=256, tk=512):
    """x: (B, In) f32, w: (Out, In) f32, b: (Out,) f32 -> (B, Out) f32."""
    B, K = x.shape
    N, Kw = w.shape
    assert Kw == K and b.shape == (N,)

    # M: sublane-aligned; N: lane-aligned (>=128 so output stores are lane
    # dense); K: padded only if it must be split across grid steps.
    Mp, tm = _plan(B, tm, 8)
    Np, tn = _plan(N, tn, 128)
    Kp, tk = _plan(K, tk, 1)

    xp = x if (Mp == B and Kp == K) else jnp.pad(x, ((0, Mp - B), (0, Kp - K)))
    wp = w if (Np == N and Kp == K) else jnp.pad(w, ((0, Np - N), (0, Kp - K)))
    bp = (b if Np == N else jnp.pad(b, (0, Np - N))).reshape(1, Np)

    k_steps = Kp // tk
    cost = pl.CostEstimate(
        flops=2 * Mp * Np * Kp,
        transcendentals=0,
        bytes_accessed=4 * (Mp * Kp + Np * Kp + Np + Mp * Np),
    )
    compiler_params_kwargs = dict(vmem_limit_bytes=64 * 1024 * 1024)

    if k_steps == 1:
        # Fast path: single MXU dot per output tile, no scratch accumulator.
        out = pl.pallas_call(
            _linear_relu_single_k_kernel,
            out_shape=jax.ShapeDtypeStruct((Mp, Np), x.dtype),
            grid=(Mp // tm, Np // tn),
            in_specs=[
                pl.BlockSpec((tm, Kp), lambda i, j: (i, 0)),   # x tile
                pl.BlockSpec((tn, Kp), lambda i, j: (j, 0)),   # W tile (Out, In)
                pl.BlockSpec((1, tn), lambda i, j: (0, j)),    # bias tile
            ],
            out_specs=pl.BlockSpec((tm, tn), lambda i, j: (i, j)),
            compiler_params=pltpu.CompilerParams(
                dimension_semantics=("parallel", "parallel"),
                **compiler_params_kwargs,
            ),
            cost_estimate=cost,
        )(xp, wp, bp)
    else:
        # K-tiled reduction path with an f32 VMEM accumulator.
        out = pl.pallas_call(
            _linear_relu_ktiled_kernel,
            out_shape=jax.ShapeDtypeStruct((Mp, Np), x.dtype),
            grid=(Mp // tm, Np // tn, k_steps),
            in_specs=[
                pl.BlockSpec((tm, tk), lambda i, j, k: (i, k)),   # x tile
                pl.BlockSpec((tn, tk), lambda i, j, k: (j, k)),   # W tile (Out, In)
                pl.BlockSpec((1, tn), lambda i, j, k: (0, j)),    # bias tile
            ],
            out_specs=pl.BlockSpec((tm, tn), lambda i, j, k: (i, j)),
            scratch_shapes=[pltpu.VMEM((tm, tn), jnp.float32)],
            compiler_params=pltpu.CompilerParams(
                dimension_semantics=("parallel", "parallel", "arbitrary"),
                **compiler_params_kwargs,
            ),
            cost_estimate=cost,
        )(xp, wp, bp)

    return out[:B, :N]


if __name__ == "__main__":
    # Shapes implied by the module: Linear(input_size, output_size) + ReLU.
    batch, input_size, hidden_size, output_size = 8, 32, 64, 16  # hidden_size unused by fc1

    key = jax.random.PRNGKey(0)
    kx, kw, kb = jax.random.split(key, 3)
    x = jax.random.normal(kx, (batch, input_size), dtype=jnp.float32)
    # PyTorch Linear-style uniform init bound.
    bound = 1.0 / (input_size ** 0.5)
    w = jax.random.uniform(kw, (output_size, input_size), dtype=jnp.float32,
                           minval=-bound, maxval=bound)
    b = jax.random.uniform(kb, (output_size,), dtype=jnp.float32,
                           minval=-bound, maxval=bound)

    out = relu_net_forward(x, w, b)
    jax.block_until_ready(out)

    # Cross-check against plain JAX reference.
    ref = jnp.maximum(x @ w.T + b, 0.0)
    assert out.shape == (batch, output_size)
    assert jnp.allclose(out, ref, atol=1e-5, rtol=1e-5)
    print("KERNEL_OK")
</pallas_src>

<mosaic_0001>
module attributes {stable_mosaic.version = 11 : i64} {
  func.func @_linear_relu_single_k_kernel(%arg0: i32, %arg1: i32, %arg2: memref<8x32xf32, #tpu.memory_space<vmem>>, %arg3: memref<128x32xf32, #tpu.memory_space<vmem>>, %arg4: memref<1x128xf32, #tpu.memory_space<vmem>>, %arg5: memref<8x128xf32, #tpu.memory_space<vmem>>) attributes {dimension_semantics = [#tpu.dimension_semantics<parallel>, #tpu.dimension_semantics<parallel>], iteration_bounds = array<i64: 1, 1>, scalar_prefetch = 0 : i64, scratch_operands = 0 : i64, tpu.core_type = #tpu.core_type<tc>, window_params = [{transform_indices = @transform_0, window_bounds = array<i64: 8, 32>}, {transform_indices = @transform_1, window_bounds = array<i64: 128, 32>}, {transform_indices = @transform_2, window_bounds = array<i64: 1, 128>}, {transform_indices = @transform_3, window_bounds = array<i64: 8, 128>}]} {
    %c0 = arith.constant 0 : index
    %c0_0 = arith.constant 0 : index
    %0 = vector.load %arg2[%c0, %c0_0] : memref<8x32xf32, #tpu.memory_space<vmem>>, vector<8x32xf32>
    %c0_1 = arith.constant 0 : index
    %c0_2 = arith.constant 0 : index
    %1 = vector.load %arg3[%c0_1, %c0_2] : memref<128x32xf32, #tpu.memory_space<vmem>>, vector<128x32xf32>
    %cst = arith.constant dense<0.000000e+00> : vector<8x128xf32>
    %2 = tpu.matmul %0, %1, %cst {dimension_numbers = #tpu.dot_dimension_numbers<[1], [1], [0], [0], [0, 0, 1, 0], [], []>} : vector<8x32xf32>, vector<128x32xf32>, vector<8x128xf32> -> vector<8x128xf32>
    %c0_3 = arith.constant 0 : index
    %c0_4 = arith.constant 0 : index
    %3 = vector.load %arg4[%c0_3, %c0_4] : memref<1x128xf32, #tpu.memory_space<vmem>>, vector<1x128xf32>
    %4 = vector.broadcast %3 : vector<1x128xf32> to vector<8x128xf32>
    %5 = arith.addf %2, %4 : vector<8x128xf32>
    %cst_5 = arith.constant 0.000000e+00 : f32
    %6 = vector.broadcast %cst_5 : f32 to vector<8x128xf32>
    %7 = arith.maximumf %5, %6 : vector<8x128xf32>
    %c0_6 = arith.constant 0 : index
    %c0_7 = arith.constant 0 : index
    %8 = vector.load %arg5[%c0_6, %c0_7] : memref<8x128xf32, #tpu.memory_space<vmem>>, vector<8x128xf32>
    tpu.vector_store %arg5[%c0_6, %c0_7], %7 {strides = array<i32>} : memref<8x128xf32, #tpu.memory_space<vmem>>, vector<8x128xf32>,
    return
  }
  func.func @transform_0(%arg0: i32, %arg1: i32) -> (i32, i32) {
    %c0_i32 = arith.constant 0 : i32
    %c0_i32_0 = arith.constant 0 : i32
    return %arg0, %c0_i32 : i32, i32
  }
  func.func @transform_1(%arg0: i32, %arg1: i32) -> (i32, i32) {
    %c0_i32 = arith.constant 0 : i32
    %c0_i32_0 = arith.constant 0 : i32
    return %arg1, %c0_i32 : i32, i32
  }
  func.func @transform_2(%arg0: i32, %arg1: i32) -> (i32, i32) {
    %c0_i32 = arith.constant 0 : i32
    %c0_i32_0 = arith.constant 0 : i32
    return %c0_i32, %arg1 : i32, i32
  }
  func.func @transform_3(%arg0: i32, %arg1: i32) -> (i32, i32) {
    %c0_i32 = arith.constant 0 : i32
    return %arg0, %arg1 : i32, i32
  }
}

</mosaic_0001>

<bundles_post_ra>
// kernel: relu_net_forward.1
= control target key start
LH: loop header
LB: loop body
LE: loop exit
PB: predicated region body
PF: predicated region fallthrough
CT: control target
= control target key end

     0   :  { %vm36_vm0 = vcmask 261120   ;;  %s266_s0 = inlined_call_operand.vmem [shape: f32[8,32], index: 0, kind: input, shape index: {}]   ;;  %s267_s1 = inlined_call_operand.vmem [shape: f32[128,32], index: 1, kind: input, shape index: {}]   ;;  %s268_s2 = inlined_call_operand.vmem [shape: f32[1,128], index: 2, kind: input, shape index: {}]   ;;  %s269_s3 = inlined_call_operand.hbm [shape: f32[8,128], index: 3, kind: output, shape index: {}]  }
   0x1   :  { %v31_v0 = vld [vmem:[%s267_s1 + $0x78] sm:$0xff]  ;;  %v30_v1 = vld [vmem:[%s267_s1 + $0x70] sm:$0xff] }
   0x2   :  { %126 = vmatpush.xpose.msk.msra.mxu0 %vm36_vm0, %v31_v0 }
   0x3   :  { %8 = vsyncpa [#allocation3], 0  ;;  %v29_v2 = vld [vmem:[%s267_s1 + $0x68] sm:$0xff]  ;;  %v28_v3 = vld [vmem:[%s267_s1 + $0x60] sm:$0xff]  ;;  %s171_s21 = smov [#allocation2]   ;;  %s117_s25 = sshll.u32 %s269_s3, 4  ;;  %s118_s25 = int_to_ptr.hbm [resolvable:$true] %s117_s25 }
   0x4   :  { %v27_v4 = vld [vmem:[%s267_s1 + $0x58] sm:$0xff]  ;;  %v26_v5 = vld [vmem:[%s267_s1 + $0x50] sm:$0xff]  ;;  %v25_v6 = vld [vmem:[%s267_s1 + $0x48] sm:$0xff]  ;;  %s115_s22 = sshll.u32 %s171_s21, 4  ;;  %s116_s22 = int_to_ptr.vmem [resolvable:$true] %s115_s22 }
   0x5   :  { %v24_v7 = vld [vmem:[%s267_s1 + $0x40] sm:$0xff]  ;;  %v23_v8 = vld [vmem:[%s267_s1 + $0x38] sm:$0xff]  ;;  %v22_v9 = vld [vmem:[%s267_s1 + $0x30] sm:$0xff] }
   0x6   :  { %127 = vmatpush.xpose.msk.msra.mxu0 %vm36_vm0, %v30_v1  ;;  %v21_v10 = vld [vmem:[%s267_s1 + $0x28] sm:$0xff]  ;;  %v20_v11 = vld [vmem:[%s267_s1 + $0x20] sm:$0xff]  ;;  %v19_v12 = vld [vmem:[%s267_s1 + $0x18] sm:$0xff] }
   0x7   :  { %v18_v13 = vld [vmem:[%s267_s1 + $0x10] sm:$0xff]  ;;  %v17_v14 = vld [vmem:[%s267_s1 + $0x8] sm:$0xff]  ;;  %v16_v15 = vld [vmem:[%s267_s1] sm:$0xff] }
   0x8   :  { %v15_v16 = vld [vmem:[%s266_s0] sm:$0xff] }
   0x9   :  { %v144_v17 = vld [vmem:[%s268_s2] ss:$0 sm:$0xff] }
   0xa   :  { %128 = vmatpush.xpose.msk.msra.mxu0 %vm36_vm0, %v29_v2 }
   0xe   :  { %129 = vmatpush.xpose.msk.msra.mxu0 %vm36_vm0, %v28_v3 }
  0x12   :  { %130 = vmatpush.xpose.msk.msra.mxu0 %vm36_vm0, %v27_v4 }
  0x16   :  { %131 = vmatpush.xpose.msk.msra.mxu0 %vm36_vm0, %v26_v5 }
  0x1a   :  { %132 = vmatpush.xpose.msk.msra.mxu0 %vm36_vm0, %v25_v6 }
  0x1e   :  { %133 = vmatpush.xpose.msk.msra.mxu0 %vm36_vm0, %v24_v7 }
  0x22   :  { %134 = vmatpush.xpose.msk.msra.mxu0 %vm36_vm0, %v23_v8 }
  0x26   :  { %135 = vmatpush.xpose.msk.msra.mxu0 %vm36_vm0, %v22_v9 }
  0x2a   :  { %136 = vmatpush.xpose.msk.msra.mxu0 %vm36_vm0, %v21_v10 }
  0x2e   :  { %137 = vmatpush.xpose.msk.msra.mxu0 %vm36_vm0, %v20_v11 }
  0x32   :  { %138 = vmatpush.xpose.msk.msra.mxu0 %vm36_vm0, %v19_v12 }
  0x36   :  { %139 = vmatpush.xpose.msk.msra.mxu0 %vm36_vm0, %v18_v13 }
  0x3a   :  { %140 = vmatpush.xpose.msk.msra.mxu0 %vm36_vm0, %v17_v14 }
  0x3e   :  { %141 = vmatpush.xpose.msk.msra.mxu0 %vm36_vm0, %v16_v15 }
  0x41   :  { %142 = vmatmul.msk.f32.vlgmr.msra.gmra.mxu0 %vm36_vm0, %v15_v16 }
  0xbe   :  { %v105_v18 = vpop.f32.mrf.mxu0 }
  0xbf   :  { %v106_v19 = vadd.f32 %v144_v17, %v105_v18 }
  0xc1   :  { %v108_v20 = vmax.f32 %v106_v19, 0.0 }
  0xc3   :  { %109 = vst [vmem:[#allocation2] sm:$0xff] %v108_v20 }
  0xc4   :  { %120 = dma.vmem_to_hbm [thread:$0]  %s116_s22, 128, %s118_s25, [#allocation3]  }
  0xc5   :  { %169 = dma.done.wait [#allocation3], 128  }
  0xc6   :  { %170 = vsyncadd [#allocation3], 4294967168 }
  0xc7   :  { %125 = vsyncpa [#allocation3], 1 }

</bundles_post_ra>
